<compile_context>
chip_gen: v6e
topology: v6e:2x2x1
jax: 0.10.0
libtpu: 0.0.40
codegen_flags: <defaults>
</compile_context>

<pallas_src>
import functools

import jax
import jax.numpy as jnp
from jax.experimental import pallas as pl
from jax.experimental.pallas import tpu as pltpu
import numpy as np

NEG_SLOPE = 0.2   # DGL GATConv default negative_slope
BN_EPS = 1e-5


def project_kernel(x_ref, wfc_ref, a_ref, wresm_ref, out_ref):
    """Per-node projections, packed into one output slab [feat | el | er | res_mean]."""
    x = x_ref[...]                                                        # (T, Cin) f32
    feat = jnp.dot(x, wfc_ref[...], preferred_element_type=jnp.float32)   # (T, H*F)
    # [el | er] logits in ONE matmul against the block-diagonal attention matrix.
    eler = jnp.dot(feat, a_ref[...], preferred_element_type=jnp.float32)  # (T, 2H)
    # Residual projection already folded to its head-mean in the wrapper: (Cin, F).
    resm = jnp.dot(x, wresm_ref[...], preferred_element_type=jnp.float32) # (T, F)
    out_ref[...] = jnp.concatenate([feat, eler, resm], axis=1)            # single wider store


def gat_attn_kernel(adj_ref, elt_ref, er_ref, feat_ref, resm_ref, biasm_ref,
                    out_ref, m_sc, acc_sc, *, num_heads):
    """Online (flash-style) masked edge-softmax + head-mean aggregation.

    Grid = (dst tiles [parallel], src tiles [arbitrary/reduction]).
    feat_ref is pre-stacked (H, N_src, F+1) with a trailing ones column, so the softmax
    denominator accumulates in the last column of the MXU output (no XLU sum needed).
    """
    k = pl.program_id(1)

    @pl.when(k == 0)
    def _():
        m_sc[...] = jnp.full_like(m_sc, -jnp.inf)
        acc_sc[...] = jnp.zeros_like(acc_sc)

    # Mask as a single additive -inf-like term; masked exps underflow to exactly 0.
    neg_mask = jnp.where(adj_ref[...] > 0, 0.0, -1e30)     # (Td, Ts) f32
    er = er_ref[...]                                        # (Td, H)  dst logits
    elt = elt_ref[...]                                      # (H, Ts)  src logits (lane-contig)
    H = num_heads

    for h in range(H):                                      # static unroll over heads
        e = er[:, h:h + 1] + elt[h:h + 1, :]                # (Td, Ts)
        e = jnp.where(e > 0, e, NEG_SLOPE * e)              # leaky_relu
        e = e + neg_mask
        m_old = m_sc[h]                                     # (Td, 1)
        m_new = jnp.maximum(m_old, jnp.max(e, axis=1, keepdims=True))
        p = jnp.exp(e - m_new)                              # (Td, Ts); masked -> 0
        corr = jnp.exp(m_old - m_new)                       # (Td, 1) running-max rescale
        # Numerator (F cols) and denominator (last col) in one MXU matmul.
        pv = jnp.dot(p.astype(feat_ref.dtype), feat_ref[h],
                     preferred_element_type=jnp.float32)    # (Td, F+1)
        acc_sc[h] = corr * acc_sc[h] + pv
        m_sc[h] = m_new

    @pl.when(k == pl.num_programs(1) - 1)
    def _():
        inv_h = 1.0 / H
        f = acc_sc.shape[-1] - 1
        out = resm_ref[...] + biasm_ref[...]                # residual + bias head-means
        for h in range(H):
            acc_h = acc_sc[h]                               # (Td, F+1)
            # EUP reciprocal of the MXU-computed denominator; 1/H head-mean folded in.
            scale = pl.reciprocal(acc_h[:, f:f + 1], approx=True) * inv_h
            out = out + acc_h[:, :f] * scale                # F-wide normalize (not N-wide)
        out_ref[...] = out


def _pick_tile(n, target, granule):
    """Largest t <= target with n % t == 0 and t % granule == 0; falls back to n."""
    t = min(target, n)
    t -= t % granule
    while t >= granule:
        if n % t == 0:
            return t
        t -= granule
    return n


def gat_layer(x, adj, wfc, attn_l, attn_r, wres, bias, gamma, beta, *,
              tile_proj=None, tile_dst=None, tile_src=None,
              matmul_dtype=jnp.float32):
    N, Cin = x.shape
    H, F = attn_l.shape
    HF = H * F

    # Decoupled tiles: big projection row tile, separately tuned attention dst/src tiles.
    tile_proj = _pick_tile(N, 2048, 8) if tile_proj is None else tile_proj
    tile_dst = _pick_tile(N, 256, 8) if tile_dst is None else tile_dst
    tile_src = _pick_tile(N, 512, 128) if tile_src is None else tile_src

    def _check(name, t, granule):
        if N % t != 0 or not (t == N or t % granule == 0):
            raise ValueError(
                f"{name}={t} must divide N={N} and be a multiple of {granule} (or equal N)")
    _check("tile_proj", tile_proj, 8)
    _check("tile_dst", tile_dst, 8)
    _check("tile_src", tile_src, 128)

    # adj only feeds `> 0` comparisons -> int8 keeps the O(N^2) DMA stream 4x smaller.
    adj_i8 = adj.astype(jnp.int8)

    # Head-mean is linear: fold residual projection and bias to their head means.
    wres_mean = wres.reshape(Cin, H, F).mean(axis=1)                  # (Cin, F)
    bias_mean = bias.reshape(H, F).mean(axis=0, keepdims=True)        # (1, F)

    # Block-diagonal attention matrix so that feat @ A = [el | er] in one matmul.
    eye = jnp.eye(H, dtype=jnp.float32)
    a_l = (eye[:, None, :] * attn_l[:, :, None]).reshape(HF, H)
    a_r = (eye[:, None, :] * attn_r[:, :, None]).reshape(HF, H)
    a_mat = jnp.concatenate([a_l, a_r], axis=1)                       # (HF, 2H)

    slab_w = HF + 2 * H + F

    # ---- Pass 1: projections (row-tiled, parallel); single packed output slab. ----
    slab = pl.pallas_call(
        project_kernel,
        out_shape=jax.ShapeDtypeStruct((N, slab_w), jnp.float32),
        grid=(N // tile_proj,),
        in_specs=[pl.BlockSpec((tile_proj, Cin), lambda i: (i, 0)),
                  pl.BlockSpec((Cin, HF), lambda i: (0, 0)),
                  pl.BlockSpec((HF, 2 * H), lambda i: (0, 0)),
                  pl.BlockSpec((Cin, F), lambda i: (0, 0))],
        out_specs=pl.BlockSpec((tile_proj, slab_w), lambda i: (i, 0)),
        compiler_params=pltpu.CompilerParams(dimension_semantics=("parallel",)),
    )(x.astype(jnp.float32), wfc.astype(jnp.float32),
      a_mat, wres_mean.astype(jnp.float32))

    feat = slab[:, :HF]                      # (N, HF) f32
    el_t = slab[:, HF:HF + H].T              # (H, N)  src logits, lane-contiguous per head
    er = slab[:, HF + H:HF + 2 * H]          # (N, H)  dst logits
    resm = slab[:, HF + 2 * H:]              # (N, F)  residual head-mean

    # Grid-invariant layout plumbing done ONCE in the wrapper (not per dst tile):
    # stack per-head features and append a ones column (MXU-computed softmax denominator).
    feat_h = feat.reshape(N, H, F).transpose(1, 0, 2)                       # (H, N, F)
    feat_aug = jnp.concatenate([feat_h, jnp.ones((H, N, 1), jnp.float32)], axis=-1)
    feat_aug = feat_aug.astype(matmul_dtype)                                # (H, N, F+1)

    # Explicit scoped-VMEM budget for pass 2 (double-buffered blocks + scratch + temporaries).
    def _bytes(shape, dt):
        return int(np.prod(shape)) * jnp.dtype(dt).itemsize
    work = 2 * (_bytes((tile_dst, tile_src), jnp.int8)
                + _bytes((H, tile_src), jnp.float32)
                + _bytes((tile_dst, H), jnp.float32)
                + _bytes((H, tile_src, F + 1), matmul_dtype)
                + 2 * _bytes((tile_dst, F), jnp.float32)
                + _bytes((1, F), jnp.float32))
    work += _bytes((H, tile_dst, 1), jnp.float32) + _bytes((H, tile_dst, F + 1), jnp.float32)
    headroom = 8 * _bytes((tile_dst, tile_src), jnp.float32) + (16 << 20)
    vmem2 = int(min(work + headroom, 64 << 20))   # stay within v7x physical VMEM

    # ---- Pass 2: online edge-softmax + aggregation (dst parallel, src reduction). ----
    hmean = pl.pallas_call(
        functools.partial(gat_attn_kernel, num_heads=H),
        out_shape=jax.ShapeDtypeStruct((N, F), jnp.float32),
        grid=(N // tile_dst, N // tile_src),
        in_specs=[pl.BlockSpec((tile_dst, tile_src), lambda i, k: (i, k)),   # adj block
                  pl.BlockSpec((H, tile_src), lambda i, k: (0, k)),          # el^T (src tile)
                  pl.BlockSpec((tile_dst, H), lambda i, k: (i, 0)),          # er (dst tile)
                  pl.BlockSpec((H, tile_src, F + 1), lambda i, k: (0, k, 0)),  # feat_aug
                  pl.BlockSpec((tile_dst, F), lambda i, k: (i, 0)),          # residual mean
                  pl.BlockSpec((1, F), lambda i, k: (0, 0))],                # bias mean
        out_specs=pl.BlockSpec((tile_dst, F), lambda i, k: (i, 0)),
        scratch_shapes=[pltpu.VMEM((H, tile_dst, 1), jnp.float32),           # running max
                        pltpu.VMEM((H, tile_dst, F + 1), jnp.float32)],      # num|denom acc
        compiler_params=pltpu.CompilerParams(
            dimension_semantics=("parallel", "arbitrary"),
            vmem_limit_bytes=vmem2),
    )(adj_i8, el_t, er, feat_aug, resm, bias_mean)

    # ---- BatchNorm1d epilogue (training-mode batch stats) in plain XLA. ----
    mu = jnp.mean(hmean, axis=0, keepdims=True)
    var = jnp.mean((hmean - mu) ** 2, axis=0, keepdims=True)
    return (hmean - mu) * jax.lax.rsqrt(var + BN_EPS) * gamma.reshape(1, -1) + beta.reshape(1, -1)


def gat_layer_reference(x, adj, wfc, al, ar, wres, bias, gamma, beta):
    """Pure-JAX reference of the same forward pass (for correctness check)."""
    N = x.shape[0]
    H, F = al.shape
    feat = x @ wfc
    feat3 = feat.reshape(N, H, F)
    el = (feat3 * al[None]).sum(-1)                              # (N, H) per src
    er = (feat3 * ar[None]).sum(-1)                              # (N, H) per dst
    e = el[None, :, :] + er[:, None, :]                          # (dst, src, H)
    e = jnp.where(e > 0, e, NEG_SLOPE * e)
    e = jnp.where(adj[:, :, None] > 0, e, -1e30)
    e = e - e.max(axis=1, keepdims=True)
    p = jnp.where(adj[:, :, None] > 0, jnp.exp(e), 0.0)
    alpha = p / p.sum(axis=1, keepdims=True)
    rst = jnp.einsum('dsh,shf->dhf', alpha, feat3)
    rst = rst + bias.reshape(1, H, F) + (x @ wres).reshape(N, H, F)
    hmean = rst.mean(axis=1)
    mu = hmean.mean(0)
    var = ((hmean - mu) ** 2).mean(0)
    return gamma.reshape(-1) * (hmean - mu) / jnp.sqrt(var + BN_EPS) + beta.reshape(-1)


if __name__ == "__main__":
    # GATLayer(in_feats=8, out_feats=8, num_heads=4); N=256 nodes so that the attention
    # grid has 2 dst tiles x 2 src tiles (exercises the online-softmax accumulation).
    N, IN_FEATS, OUT_FEATS, NUM_HEADS = 256, 8, 8, 4
    HF = NUM_HEADS * OUT_FEATS

    key = jax.random.PRNGKey(0)
    k_x, k_adj, k_wfc, k_al, k_ar, k_wres = jax.random.split(key, 6)

    x = jax.random.normal(k_x, (N, IN_FEATS), jnp.float32)

    # Random sparse graph with self-loops (dense adjacency mask: adj[dst, src]).
    adj = (jax.random.uniform(k_adj, (N, N)) < 0.1).astype(jnp.float32)
    adj = jnp.maximum(adj, jnp.eye(N, dtype=jnp.float32))

    # Deterministic parameter init (xavier-style scaling).
    wfc = jax.random.normal(k_wfc, (IN_FEATS, HF), jnp.float32) * np.sqrt(2.0 / (IN_FEATS + HF))
    attn_l = jax.random.normal(k_al, (NUM_HEADS, OUT_FEATS), jnp.float32) * np.sqrt(2.0 / (1 + OUT_FEATS))
    attn_r = jax.random.normal(k_ar, (NUM_HEADS, OUT_FEATS), jnp.float32) * np.sqrt(2.0 / (1 + OUT_FEATS))
    # residual=True and in_feats != num_heads*out_feats -> res_fc is Linear(no bias)
    wres = jax.random.normal(k_wres, (IN_FEATS, HF), jnp.float32) * np.sqrt(2.0 / (IN_FEATS + HF))
    bias = jnp.zeros((1, HF), jnp.float32)          # DGL GATConv bias init = zeros
    gamma = jnp.ones((1, OUT_FEATS), jnp.float32)   # BatchNorm1d weight
    beta = jnp.zeros((1, OUT_FEATS), jnp.float32)   # BatchNorm1d bias

    ref = gat_layer_reference(x, adj, wfc, attn_l, attn_r, wres, bias, gamma, beta)

    # f32 aggregation operands; 2x2 attention grid. Tolerance leaves headroom for the
    # EUP approximate reciprocal used in the softmax normalization.
    out = gat_layer(x, adj, wfc, attn_l, attn_r, wres, bias, gamma, beta,
                    tile_proj=256, tile_dst=128, tile_src=128,
                    matmul_dtype=jnp.float32)
    out = jax.block_until_ready(out)
    np.testing.assert_allclose(np.asarray(out), np.asarray(ref), rtol=5e-3, atol=5e-3)

    # bf16 aggregation operands (v6e/v7x MXU fast path); logits/softmax stay f32.
    out_bf16 = gat_layer(x, adj, wfc, attn_l, attn_r, wres, bias, gamma, beta,
                         tile_proj=256, tile_dst=128, tile_src=128,
                         matmul_dtype=jnp.bfloat16)
    out_bf16 = jax.block_until_ready(out_bf16)
    np.testing.assert_allclose(np.asarray(out_bf16), np.asarray(ref), rtol=1e-1, atol=1e-1)

    print("KERNEL_OK")
</pallas_src>

<mosaic_0001>
module attributes {stable_mosaic.version = 11 : i64} {
  func.func @project_kernel(%arg0: i32, %arg1: memref<256x8xf32, #tpu.memory_space<vmem>>, %arg2: memref<8x32xf32, #tpu.memory_space<vmem>>, %arg3: memref<32x8xf32, #tpu.memory_space<vmem>>, %arg4: memref<8x8xf32, #tpu.memory_space<vmem>>, %arg5: memref<256x48xf32, #tpu.memory_space<vmem>>) attributes {dimension_semantics = [#tpu.dimension_semantics<parallel>], iteration_bounds = array<i64: 1>, scalar_prefetch = 0 : i64, scratch_operands = 0 : i64, tpu.core_type = #tpu.core_type<tc>, window_params = [{transform_indices = @transform_0, window_bounds = array<i64: 256, 8>}, {pipeline_mode = #tpu.pipeline_mode<synchronous>, transform_indices = @transform_1, window_bounds = array<i64: 8, 32>}, {pipeline_mode = #tpu.pipeline_mode<synchronous>, transform_indices = @transform_2, window_bounds = array<i64: 32, 8>}, {pipeline_mode = #tpu.pipeline_mode<synchronous>, transform_indices = @transform_3, window_bounds = array<i64: 8, 8>}, {transform_indices = @transform_4, window_bounds = array<i64: 256, 48>}]} {
    %c0 = arith.constant 0 : index
    %c0_0 = arith.constant 0 : index
    %0 = vector.load %arg1[%c0, %c0_0] : memref<256x8xf32, #tpu.memory_space<vmem>>, vector<256x8xf32>
    %c0_1 = arith.constant 0 : index
    %c0_2 = arith.constant 0 : index
    %1 = vector.load %arg2[%c0_1, %c0_2] : memref<8x32xf32, #tpu.memory_space<vmem>>, vector<8x32xf32>
    %cst = arith.constant dense<0.000000e+00> : vector<256x32xf32>
    %2 = tpu.matmul %0, %1, %cst {dimension_numbers = #tpu.dot_dimension_numbers<[1], [0], [0], [1], [0, 0, 1, 1], [], []>} : vector<256x8xf32>, vector<8x32xf32>, vector<256x32xf32> -> vector<256x32xf32>
    %c0_3 = arith.constant 0 : index
    %c0_4 = arith.constant 0 : index
    %3 = vector.load %arg3[%c0_3, %c0_4] : memref<32x8xf32, #tpu.memory_space<vmem>>, vector<32x8xf32>
    %cst_5 = arith.constant dense<0.000000e+00> : vector<256x8xf32>
    %4 = tpu.matmul %2, %3, %cst_5 {dimension_numbers = #tpu.dot_dimension_numbers<[1], [0], [0], [1], [0, 0, 1, 1], [], []>} : vector<256x32xf32>, vector<32x8xf32>, vector<256x8xf32> -> vector<256x8xf32>
    %c0_6 = arith.constant 0 : index
    %c0_7 = arith.constant 0 : index
    %5 = vector.load %arg4[%c0_6, %c0_7] : memref<8x8xf32, #tpu.memory_space<vmem>>, vector<8x8xf32>
    %cst_8 = arith.constant dense<0.000000e+00> : vector<256x8xf32>
    %6 = tpu.matmul %0, %5, %cst_8 {dimension_numbers = #tpu.dot_dimension_numbers<[1], [0], [0], [1], [0, 0, 1, 1], [], []>} : vector<256x8xf32>, vector<8x8xf32>, vector<256x8xf32> -> vector<256x8xf32>
    %7 = tpu.concatenate %2, %4, %6 in 1 : vector<256x32xf32>, vector<256x8xf32>, vector<256x8xf32> -> vector<256x48xf32>
    %c0_9 = arith.constant 0 : index
    %c0_10 = arith.constant 0 : index
    %8 = vector.load %arg5[%c0_9, %c0_10] : memref<256x48xf32, #tpu.memory_space<vmem>>, vector<256x48xf32>
    tpu.vector_store %arg5[%c0_9, %c0_10], %7 {strides = array<i32>} : memref<256x48xf32, #tpu.memory_space<vmem>>, vector<256x48xf32>,
    return
  }
  func.func @transform_0(%arg0: i32) -> (i32, i32) {
    %c0_i32 = arith.constant 0 : i32
    %c0_i32_0 = arith.constant 0 : i32
    return %arg0, %c0_i32 : i32, i32
  }
  func.func @transform_1(%arg0: i32) -> (i32, i32) {
    %c0_i32 = arith.constant 0 : i32
    %c0_i32_0 = arith.constant 0 : i32
    %c0_i32_1 = arith.constant 0 : i32
    return %c0_i32, %c0_i32_0 : i32, i32
  }
  func.func @transform_2(%arg0: i32) -> (i32, i32) {
    %c0_i32 = arith.constant 0 : i32
    %c0_i32_0 = arith.constant 0 : i32
    %c0_i32_1 = arith.constant 0 : i32
    return %c0_i32, %c0_i32_0 : i32, i32
  }
  func.func @transform_3(%arg0: i32) -> (i32, i32) {
    %c0_i32 = arith.constant 0 : i32
    %c0_i32_0 = arith.constant 0 : i32
    %c0_i32_1 = arith.constant 0 : i32
    return %c0_i32, %c0_i32_0 : i32, i32
  }
  func.func @transform_4(%arg0: i32) -> (i32, i32) {
    %c0_i32 = arith.constant 0 : i32
    %c0_i32_0 = arith.constant 0 : i32
    return %arg0, %c0_i32 : i32, i32
  }
}

</mosaic_0001>

<bundles_post_ra>
// kernel: tpu_custom_call.1
= control target key start
LH: loop header
LB: loop body
LE: loop exit
PB: predicated region body
PF: predicated region fallthrough
CT: control target
= control target key end

     0   :  { %vm50_vm0 = vcmask 64512   ;;  %vm376_vm1 = vcmask 261120   ;;  %s1641_s7 = smov 32   ;;  %vm1212_vm2 = vcmask 326656   ;;  %vm1245_vm3 = vcmask 392192   ;;  %s2407_s1 = inlined_call_operand.vmem [shape: f32[8,32], index: 1, kind: input, shape index: {}]   ;;  %s2408_s0 = inlined_call_operand.vmem [shape: f32[256,8], index: 0, kind: input, shape index: {}]   ;;  %s2409_s3 = inlined_call_operand.vmem [shape: f32[8,8], index: 3, kind: input, shape index: {}]   ;;  %s2410_s2 = inlined_call_operand.vmem [shape: f32[32,8], index: 2, kind: input, shape index: {}]   ;;  %s2411_s4 = inlined_call_operand.vmem [shape: f32[256,48], index: 4, kind: output, shape index: {}]  }
   0x1   :  { %v49_v0 = vld [vmem:[%s2407_s1] sm:$0xff]  ;;  %v1678_v2 = vld [vmem:[%s2408_s0 + $0x8] sm:$0xff]  ;;  %v1685_v3 = vld [vmem:[%s2408_s0 + $0x10] sm:$0xff] }
   0x2   :  { %v1673_v1 = vld [vmem:[%s2408_s0] sm:$0xff]  ;;  %1480 = vmatprep.subr.mxu0 %v49_v0  ;;  %1636 = vmatprep.subr.mxu1 %v49_v0  ;;  %v1694_v4 = vld [vmem:[%s2408_s0 + $0x18] sm:$0xff]  ;;  %v1711_v7 = vld [vmem:[%s2408_s0 + $0x88] sm:$0xff] }
   0x3   :  { %1482 = vmatprep.mubr.msk.f32.mxu0 %vm50_vm0, %v1673_v1  ;;  %1481 = vmatpush3.msra.mxu0 %v49_v0  ;;  %v1699_v5 = vld [vmem:[%s2408_s0 + $0x20] sm:$0xff]  ;;  %v1716_v8 = vld [vmem:[%s2408_s0 + $0x90] sm:$0xff]  ;;  %v1727_v9 = vld [vmem:[%s2408_s0 + $0x28] sm:$0xff] }
   0x4   :  { %1483 = vmatmul.mubr.msk.f32.vlgmr.msra.gmra.mxu0 %vm50_vm0, %v1678_v2  ;;  %1637 = vmatpush3.msra.mxu1 %v49_v0  ;;  %v1704_v6 = vld [vmem:[%s2408_s0 + $0x80] sm:$0xff]  ;;  %v1734_v10 = vld [vmem:[%s2408_s0 + $0x98] sm:$0xff]  ;;  %v1739_v11 = vld [vmem:[%s2408_s0 + $0x30] sm:$0xff] }
   0x5   :  { %1485 = vmatprep.mubr.msk.f32.mxu0 %vm50_vm0, %v1685_v3  ;;  %1506 = vmatprep.mubr.msk.f32.mxu1 %vm50_vm0, %v1704_v6  ;;  %v1744_v12 = vld [vmem:[%s2408_s0 + $0xa0] sm:$0xff]  ;;  %v375_v14 = vld [vmem:[%s2410_s2 + $0x18] sm:$0xff]  ;;  %v1766_v16 = vld [vmem:[%s2408_s0 + $0xa8] sm:$0xff] }
   0x6   :  { %1507 = vmatmul.mubr.msk.f32.vlgmr.msra.gmra.mxu1 %vm50_vm0, %v1711_v7  ;;  %v698_v13 = vld [vmem:[%s2409_s3] sm:$0xff]  ;;  %v24_v15 = vld [vmem:[%s2408_s0 + $0x38] sm:$0xff]  ;;  %v1774_v18 = vld [vmem:[%s2408_s0 + $0xb0] sm:$0xff]  ;;  %1530 = vmatprep.subr.mxu1 %v375_v14 }
   0x7   :  { %1509 = vmatprep.mubr.msk.f32.mxu1 %vm50_vm0, %v1716_v8  ;;  %v25_v17 = vld [vmem:[%s2408_s0 + $0x40] sm:$0xff]  ;;  %1586 = vmatprep.subr.mxu0 %v698_v13  ;;  %v374_v19 = vld [vmem:[%s2410_s2 + $0x10] sm:$0xff]  ;;  %v26_v20 = vld [vmem:[%s2408_s0 + $0x48] sm:$0xff] }
   0x8   :  { %1486 = vmatmul.mubr.msk.f32.gmra.mxu0 %vm50_vm0, %v1694_v4  ;;  %1531 = vmatpush3.msra.mxu1 %v375_v14  ;;  %v40_v21 = vld [vmem:[%s2408_s0 + $0xb8] sm:$0xff]  ;;  %v27_v22 = vld [vmem:[%s2408_s0 + $0x50] sm:$0xff]  ;;  %v41_v23 = vld [vmem:[%s2408_s0 + $0xc0] sm:$0xff] }
   0x9   :  { %1488 = vmatprep.mubr.msk.f32.mxu0 %vm50_vm0, %v1699_v5  ;;  %1587 = vmatpush3.msra.mxu0 %v698_v13  ;;  %v373_v24 = vld [vmem:[%s2410_s2 + $0x8] sm:$0xff]  ;;  %v28_v25 = vld [vmem:[%s2408_s0 + $0x58] sm:$0xff]  ;;  %v29_v27 = vld [vmem:[%s2408_s0 + $0x60] sm:$0xff] }
   0xa   :  { %1510 = vmatmul.mubr.msk.f32.gmra.mxu1 %vm50_vm0, %v1734_v10  ;;  %1532 = vmatprep.subr.mxu1 %v374_v19  ;;  %v42_v26 = vld [vmem:[%s2408_s0 + $0xc8] sm:$0xff]  ;;  %v43_v28 = vld [vmem:[%s2408_s0 + $0xd0] sm:$0xff]  ;;  %v372_v29 = vld [vmem:[%s2410_s2] sm:$0xff] }
   0xb   :  { %1512 = vmatprep.mubr.msk.f32.mxu1 %vm50_vm0, %v1744_v12  ;;  %1533 = vmatpush3.msra.mxu1 %v374_v19  ;;  %v30_v30 = vld [vmem:[%s2408_s0 + $0x68] sm:$0xff]  ;;  %v44_v31 = vld [vmem:[%s2408_s0 + $0xd8] sm:$0xff]  ;;  %v31_v32 = vld [vmem:[%s2408_s0 + $0x70] sm:$0xff] }
   0xc   :  { %1489 = vmatmul.mubr.msk.f32.gmra.mxu0 %vm50_vm0, %v1727_v9  ;;  %1534 = vmatprep.subr.mxu1 %v373_v24  ;;  %v45_v33 = vld [vmem:[%s2408_s0 + $0xe0] sm:$0xff]  ;;  %v32_v34 = vld [vmem:[%s2408_s0 + $0x78] sm:$0xff]  ;;  %v46_v35 = vld [vmem:[%s2408_s0 + $0xe8] sm:$0xff] }
   0xd   :  { %1491 = vmatprep.mubr.msk.f32.mxu0 %vm50_vm0, %v1739_v11  ;;  %1535 = vmatpush3.msra.mxu1 %v373_v24  ;;  %v47_v36 = vld [vmem:[%s2408_s0 + $0xf0] sm:$0xff]  ;;  %v48_v37 = vld [vmem:[%s2408_s0 + $0xf8] sm:$0xff]  ;;  %s1640_s0 = smov 40  }
   0xe   :  { %1513 = vmatmul.mubr.msk.f32.gmra.mxu1 %vm50_vm0, %v1766_v16  ;;  %1536 = vmatprep.subr.mxu1 %v372_v29 }
   0xf   :  { %1515 = vmatprep.mubr.msk.f32.mxu1 %vm50_vm0, %v1774_v18  ;;  %1537 = vmatpush3.msra.mxu1 %v372_v29 }
  0x10   :  { %1492 = vmatmul.mubr.msk.f32.gmra.mxu0 %vm50_vm0, %v24_v15 }
  0x11   :  { %1494 = vmatprep.mubr.msk.f32.mxu0 %vm50_vm0, %v25_v17 }
  0x12   :  { %1516 = vmatmul.mubr.msk.f32.gmra.mxu1 %vm50_vm0, %v40_v21 }
  0x13   :  { %1518 = vmatprep.mubr.msk.f32.mxu1 %vm50_vm0, %v41_v23 }
  0x14   :  { %1495 = vmatmul.mubr.msk.f32.gmra.mxu0 %vm50_vm0, %v26_v20 }
  0x15   :  { %1497 = vmatprep.mubr.msk.f32.mxu0 %vm50_vm0, %v27_v22 }
  0x16   :  { %1519 = vmatmul.mubr.msk.f32.gmra.mxu1 %vm50_vm0, %v42_v26 }
  0x17   :  { %1521 = vmatprep.mubr.msk.f32.mxu1 %vm50_vm0, %v43_v28 }
  0x18   :  { %1498 = vmatmul.mubr.msk.f32.gmra.mxu0 %vm50_vm0, %v28_v25 }
  0x19   :  { %1500 = vmatprep.mubr.msk.f32.mxu0 %vm50_vm0, %v29_v27 }
  0x1a   :  { %1522 = vmatmul.mubr.msk.f32.gmra.mxu1 %vm50_vm0, %v44_v31 }
  0x1b   :  { %1524 = vmatprep.mubr.msk.f32.mxu1 %vm50_vm0, %v45_v33 }
  0x1c   :  { %1501 = vmatmul.mubr.msk.f32.gmra.mxu0 %vm50_vm0, %v30_v30 }
  0x1d   :  { %1503 = vmatprep.mubr.msk.f32.mxu0 %vm50_vm0, %v31_v32 }
  0x1e   :  { %1525 = vmatmul.mubr.msk.f32.gmra.mxu1 %vm50_vm0, %v46_v35 }
  0x1f   :  { %1527 = vmatprep.mubr.msk.f32.mxu1 %vm50_vm0, %v47_v36 }
  0x20   :  { %1504 = vmatmul.mubr.msk.f32.gmra.mxu0 %vm50_vm0, %v32_v34 }
  0x21   :  { %1588 = vmatprep.mubr.msk.f32.mxu0 %vm50_vm0, %v1673_v1 }
  0x22   :  { %1528 = vmatmul.mubr.msk.f32.gmra.mxu1 %vm50_vm0, %v48_v37 }
  0x24   :  { %1589 = vmatmul.mubr.msk.f32.vlgmr.msra.gmra.mxu0 %vm50_vm0, %v1678_v2 }
  0x25   :  { %1591 = vmatprep.mubr.msk.f32.mxu0 %vm50_vm0, %v1685_v3 }
  0x28   :  { %1592 = vmatmul.mubr.msk.f32.gmra.mxu0 %vm50_vm0, %v1694_v4 }
  0x29   :  { %1594 = vmatprep.mubr.msk.f32.mxu0 %vm50_vm0, %v1699_v5 }
  0x2c   :  { %1595 = vmatmul.mubr.msk.f32.gmra.mxu0 %vm50_vm0, %v1727_v9 }
  0x2d   :  { %1597 = vmatprep.mubr.msk.f32.mxu0 %vm50_vm0, %v1739_v11 }
  0x30   :  { %1598 = vmatmul.mubr.msk.f32.gmra.mxu0 %vm50_vm0, %v24_v15 }
  0x31   :  { %1600 = vmatprep.mubr.msk.f32.mxu0 %vm50_vm0, %v25_v17 }
  0x34   :  { %1601 = vmatmul.mubr.msk.f32.gmra.mxu0 %vm50_vm0, %v26_v20 }
  0x35   :  { %1603 = vmatprep.mubr.msk.f32.mxu0 %vm50_vm0, %v27_v22 }
  0x38   :  { %1604 = vmatmul.mubr.msk.f32.gmra.mxu0 %vm50_vm0, %v28_v25 }
  0x39   :  { %1606 = vmatprep.mubr.msk.f32.mxu0 %vm50_vm0, %v29_v27 }
  0x3c   :  { %1607 = vmatmul.mubr.msk.f32.gmra.mxu0 %vm50_vm0, %v30_v30 }
  0x3d   :  { %1609 = vmatprep.mubr.msk.f32.mxu0 %vm50_vm0, %v31_v32 }
  0x40   :  { %1610 = vmatmul.mubr.msk.f32.gmra.mxu0 %vm50_vm0, %v32_v34 }
  0x41   :  { %1612 = vmatprep.mubr.msk.f32.mxu0 %vm50_vm0, %v1704_v6 }
  0x44   :  { %1613 = vmatmul.mubr.msk.f32.gmra.mxu0 %vm50_vm0, %v1711_v7 }
  0x45   :  { %1615 = vmatprep.mubr.msk.f32.mxu0 %vm50_vm0, %v1716_v8 }
  0x48   :  { %1616 = vmatmul.mubr.msk.f32.gmra.mxu0 %vm50_vm0, %v1734_v10 }
  0x49   :  { %1618 = vmatprep.mubr.msk.f32.mxu0 %vm50_vm0, %v1744_v12 }
  0x4c   :  { %1619 = vmatmul.mubr.msk.f32.gmra.mxu0 %vm50_vm0, %v1766_v16 }
  0x4d   :  { %1621 = vmatprep.mubr.msk.f32.mxu0 %vm50_vm0, %v1774_v18 }
  0x50   :  { %1622 = vmatmul.mubr.msk.f32.gmra.mxu0 %vm50_vm0, %v40_v21 }
  0x51   :  { %1624 = vmatprep.mubr.msk.f32.mxu0 %vm50_vm0, %v41_v23 }
  0x54   :  { %1625 = vmatmul.mubr.msk.f32.gmra.mxu0 %vm50_vm0, %v42_v26 }
  0x55   :  { %1627 = vmatprep.mubr.msk.f32.mxu0 %vm50_vm0, %v43_v28 }
  0x58   :  { %1628 = vmatmul.mubr.msk.f32.gmra.mxu0 %vm50_vm0, %v44_v31 }
  0x59   :  { %1630 = vmatprep.mubr.msk.f32.mxu0 %vm50_vm0, %v45_v33 }
  0x5c   :  { %1631 = vmatmul.mubr.msk.f32.gmra.mxu0 %vm50_vm0, %v46_v35 }
  0x5d   :  { %1633 = vmatprep.mubr.msk.f32.mxu0 %vm50_vm0, %v47_v36 }
  0x60   :  { %1634 = vmatmul.mubr.msk.f32.gmra.mxu0 %vm50_vm0, %v48_v37 }
  0xc4   :  { %v1901_v38 = vpop.f32.mrf.mxu0 }
  0xc6   :  { %v1903_v39 = vpop.f32.mrf.mxu0  ;;  %v1911_v41 = vpop.f32.mrf.mxu1 }
  0xc7   :  { %1538 = vmatprep.mubr.msk.f32.mxu1 %vm376_vm1, %v1903_v39 }
  0xc8   :  { %v1907_v40 = vpop.f32.mrf.mxu0  ;;  %1539 = vmatmul.mubr.msk.f32.vlgmr.msra.gmra.mxu1 %vm376_vm1, %v1901_v38  ;;  %v1915_v43 = vpop.f32.mrf.mxu1 }
  0xca   :  { %v1913_v42 = vpop.f32.mrf.mxu0  ;;  %v1923_v45 = vpop.f32.mrf.mxu1 }
  0xcb   :  { %1541 = vmatprep.mubr.msk.f32.mxu1 %vm376_vm1, %v1913_v42 }
  0xcc   :  { %v1919_v44 = vpop.f32.mrf.mxu0  ;;  %1542 = vmatmul.mubr.msk.f32.gmra.mxu1 %vm376_vm1, %v1907_v40  ;;  %v1927_v47 = vpop.f32.mrf.mxu1 }
  0xce   :  { %v1925_v46 = vpop.f32.mrf.mxu0  ;;  %v1937_v50 = vpop.f32.mrf.mxu1 }
  0xcf   :  { %1544 = vmatprep.mubr.msk.f32.mxu1 %vm376_vm1, %v1925_v46 }
  0xd0   :  { %v1931_v48 = vpop.f32.mrf.mxu0  ;;  %1545 = vmatmul.mubr.msk.f32.gmra.mxu1 %vm376_vm1, %v1919_v44  ;;  %v1947_v53 = vpop.f32.mrf.mxu1 }
  0xd2   :  { %v1935_v49 = vpop.f32.mrf.mxu0  ;;  %v1957_v56 = vpop.f32.mrf.mxu1 }
  0xd3   :  { %1547 = vmatprep.mubr.msk.f32.mxu1 %vm376_vm1, %v1935_v49 }
  0xd4   :  { %v1941_v51 = vpop.f32.mrf.mxu0  ;;  %1548 = vmatmul.mubr.msk.f32.gmra.mxu1 %vm376_vm1, %v1931_v48  ;;  %v1967_v59 = vpop.f32.mrf.mxu1 }
  0xd6   :  { %v1945_v52 = vpop.f32.mrf.mxu0  ;;  %v1977_v62 = vpop.f32.mrf.mxu1 }
  0xd7   :  { %1550 = vmatprep.mubr.msk.f32.mxu1 %vm376_vm1, %v1945_v52 }
  0xd8   :  { %v1951_v54 = vpop.f32.mrf.mxu0  ;;  %1551 = vmatmul.mubr.msk.f32.gmra.mxu1 %vm376_vm1, %v1941_v51  ;;  %v1986_v0 = vpop.f32.mrf.mxu1 }
  0xda   :  { %v1955_v55 = vpop.f32.mrf.mxu0  ;;  %v1994_v3 = vpop.f32.mrf.mxu1 }
  0xdb   :  { %1553 = vmatprep.mubr.msk.f32.mxu1 %vm376_vm1, %v1955_v55 }
  0xdc   :  { %v1961_v57 = vpop.f32.mrf.mxu0  ;;  %1554 = vmatmul.mubr.msk.f32.gmra.mxu1 %vm376_vm1, %v1951_v54  ;;  %v2002_v6 = vpop.f32.mrf.mxu1 }
  0xde   :  { %v1965_v58 = vpop.f32.mrf.mxu0  ;;  %v2010_v9 = vpop.f32.mrf.mxu1 }
  0xdf   :  { %1556 = vmatprep.mubr.msk.f32.mxu1 %vm376_vm1, %v1965_v58  ;;  %2416 = vst [vmem:[#allocation2_spill] sm:$0xff] %v2010_v9 }
  0xe0   :  { %v1971_v60 = vpop.f32.mrf.mxu0  ;;  %1557 = vmatmul.mubr.msk.f32.gmra.mxu1 %vm376_vm1, %v1961_v57  ;;  %v2018_v12 = vpop.f32.mrf.mxu1 }
  0xe1   :  { %2417 = vst [vmem:[#allocation3_spill] sm:$0xff] %v2018_v12 }
  0xe2   :  { %v1975_v61 = vpop.f32.mrf.mxu0  ;;  %v2026_v15 = vpop.f32.mrf.mxu1 }
  0xe3   :  { %1559 = vmatprep.mubr.msk.f32.mxu1 %vm376_vm1, %v1975_v61  ;;  %2418 = vst [vmem:[#allocation4_spill] sm:$0xff] %v2026_v15 }
  0xe4   :  { %1560 = vmatmul.mubr.msk.f32.gmra.mxu1 %vm376_vm1, %v1971_v60  ;;  %v1590_v63 = vpop.f32.mrf.mxu0  ;;  %v2034_v18 = vpop.f32.mrf.mxu1 }
  0xe5   :  { %1562 = vmatprep.mubr.msk.f32.mxu1 %vm376_vm1, %v1915_v43  ;;  %1086 = vrot.lane.b32.xlu1 %v1590_v63, %s1640_s0  ;;  %2419 = vst [vmem:[#allocation5_spill] sm:$0xff] %v2034_v18 }
  0xe6   :  { %v765_v1 = vpop.f32.mrf.mxu0 }
  0xe7   :  { %1084 = vrot.lane.b32.xlu0 %v765_v1, %s1640_s0 }
  0xe8   :  { %1563 = vmatmul.mubr.msk.f32.gmra.mxu1 %vm376_vm1, %v1911_v41  ;;  %v1593_v2 = vpop.f32.mrf.mxu0 }
  0xe9   :  { %1565 = vmatprep.mubr.msk.f32.mxu1 %vm376_vm1, %v1927_v47  ;;  %1090 = vrot.lane.b32.xlu1 %v1593_v2, %s1640_s0 }
  0xea   :  { %v775_v4 = vpop.f32.mrf.mxu0 }
  0xeb   :  { %1088 = vrot.lane.b32.xlu0 %v775_v4, %s1640_s0 }
  0xec   :  { %1566 = vmatmul.mubr.msk.f32.gmra.mxu1 %vm376_vm1, %v1923_v45  ;;  %v1596_v5 = vpop.f32.mrf.mxu0 }
  0xed   :  { %1568 = vmatprep.mubr.msk.f32.mxu1 %vm376_vm1, %v1947_v53  ;;  %1094 = vrot.lane.b32.xlu1 %v1596_v5, %s1640_s0 }
  0xee   :  { %v785_v7 = vpop.f32.mrf.mxu0 }
  0xef   :  { %1092 = vrot.lane.b32.xlu0 %v785_v7, %s1640_s0 }
  0xf0   :  { %1569 = vmatmul.mubr.msk.f32.gmra.mxu1 %vm376_vm1, %v1937_v50  ;;  %v1599_v8 = vpop.f32.mrf.mxu0 }
  0xf1   :  { %1571 = vmatprep.mubr.msk.f32.mxu1 %vm376_vm1, %v1967_v59  ;;  %1098 = vrot.lane.b32.xlu1 %v1599_v8, %s1640_s0 }
  0xf2   :  { %v795_v10 = vpop.f32.mrf.mxu0 }
  0xf3   :  { %1096 = vrot.lane.b32.xlu0 %v795_v10, %s1640_s0 }
  0xf4   :  { %1572 = vmatmul.mubr.msk.f32.gmra.mxu1 %vm376_vm1, %v1957_v56  ;;  %v1602_v11 = vpop.f32.mrf.mxu0 }
  0xf5   :  { %1574 = vmatprep.mubr.msk.f32.mxu1 %vm376_vm1, %v1986_v0  ;;  %1102 = vrot.lane.b32.xlu1 %v1602_v11, %s1640_s0 }
  0xf6   :  { %v805_v13 = vpop.f32.mrf.mxu0 }
  0xf7   :  { %1100 = vrot.lane.b32.xlu0 %v805_v13, %s1640_s0 }
  0xf8   :  { %1575 = vmatmul.mubr.msk.f32.gmra.mxu1 %vm376_vm1, %v1977_v62  ;;  %v1605_v14 = vpop.f32.mrf.mxu0 }
  0xf9   :  { %1577 = vmatprep.mubr.msk.f32.mxu1 %vm376_vm1, %v2002_v6  ;;  %1106 = vrot.lane.b32.xlu1 %v1605_v14, %s1640_s0 }
  0xfa   :  { %v815_v16 = vpop.f32.mrf.mxu0 }
  0xfb   :  { %1104 = vrot.lane.b32.xlu0 %v815_v16, %s1640_s0 }
  0xfc   :  { %1578 = vmatmul.mubr.msk.f32.gmra.mxu1 %vm376_vm1, %v1994_v3  ;;  %v1608_v17 = vpop.f32.mrf.mxu0 }
  0xfd   :  { %1580 = vmatprep.mubr.msk.f32.mxu1 %vm376_vm1, %v2018_v12  ;;  %1110 = vrot.lane.b32.xlu1 %v1608_v17, %s1640_s0 }
  0xfe   :  { %v825_v19 = vpop.f32.mrf.mxu0 }
  0xff   :  { %1108 = vrot.lane.b32.xlu0 %v825_v19, %s1640_s0 }
 0x100   :  { %1581 = vmatmul.mubr.msk.f32.gmra.mxu1 %vm376_vm1, %v2010_v9  ;;  %v1611_v20 = vpop.f32.mrf.mxu0 }
 0x101   :  { %1583 = vmatprep.mubr.msk.f32.mxu1 %vm376_vm1, %v2034_v18  ;;  %1114 = vrot.lane.b32.xlu1 %v1611_v20, %s1640_s0 }
 0x102   :  { %v835_v21 = vpop.f32.mrf.mxu0 }
 0x103   :  { %1112 = vrot.lane.b32.xlu0 %v835_v21, %s1640_s0 }
 0x104   :  { %1584 = vmatmul.mubr.msk.f32.gmra.mxu1 %vm376_vm1, %v2026_v15  ;;  %v1614_v22 = vpop.f32.mrf.mxu0 }
 0x105   :  { %1118 = vrot.lane.b32.xlu1 %v1614_v22, %s1640_s0 }
 0x106   :  { %v845_v23 = vpop.f32.mrf.mxu0 }
 0x107   :  { %1116 = vrot.lane.b32.xlu0 %v845_v23, %s1640_s0 }
 0x108   :  { %v1617_v24 = vpop.f32.mrf.mxu0 }
 0x109   :  { %1122 = vrot.lane.b32.xlu1 %v1617_v24, %s1640_s0 }
 0x10a   :  { %v855_v25 = vpop.f32.mrf.mxu0 }
 0x10b   :  { %1120 = vrot.lane.b32.xlu0 %v855_v25, %s1640_s0 }
 0x10c   :  { %v1620_v26 = vpop.f32.mrf.mxu0 }
 0x10d   :  { %1126 = vrot.lane.b32.xlu1 %v1620_v26, %s1640_s0 }
 0x10e   :  { %v865_v27 = vpop.f32.mrf.mxu0 }
 0x10f   :  { %1124 = vrot.lane.b32.xlu0 %v865_v27, %s1640_s0 }
 0x110   :  { %v1623_v28 = vpop.f32.mrf.mxu0 }
 0x111   :  { %1130 = vrot.lane.b32.xlu1 %v1623_v28, %s1640_s0 }
 0x112   :  { %v875_v29 = vpop.f32.mrf.mxu0 }
 0x113   :  { %1128 = vrot.lane.b32.xlu0 %v875_v29, %s1640_s0 }
 0x114   :  { %v1626_v30 = vpop.f32.mrf.mxu0 }
 0x115   :  { %1134 = vrot.lane.b32.xlu1 %v1626_v30, %s1640_s0 }
 0x116   :  { %v885_v31 = vpop.f32.mrf.mxu0 }
 0x117   :  { %1132 = vrot.lane.b32.xlu0 %v885_v31, %s1640_s0 }
 0x118   :  { %v1629_v32 = vpop.f32.mrf.mxu0 }
 0x119   :  { %1138 = vrot.lane.b32.xlu1 %v1629_v32, %s1640_s0 }
 0x11a   :  { %v895_v33 = vpop.f32.mrf.mxu0 }
 0x11b   :  { %1136 = vrot.lane.b32.xlu0 %v895_v33, %s1640_s0 }
 0x11c   :  { %v1632_v34 = vpop.f32.mrf.mxu0 }
 0x11d   :  { %1142 = vrot.lane.b32.xlu1 %v1632_v34, %s1640_s0 }
 0x11e   :  { %v905_v35 = vpop.f32.mrf.mxu0 }
 0x11f   :  { %1140 = vrot.lane.b32.xlu0 %v905_v35, %s1640_s0 }
 0x157   :  { %v2076_v21 = vpop.permute.xlu1 %1086 }
 0x159   :  { %v2071_v16 = vpop.permute.xlu0 %1084 }
 0x15b   :  { %v2083_v26 = vpop.permute.xlu1 %1090 }
 0x15d   :  { %v2078_v22 = vpop.permute.xlu0 %1088 }
 0x15f   :  { %v2090_v31 = vpop.permute.xlu1 %1094 }
 0x161   :  { %v2085_v27 = vpop.permute.xlu0 %1092 }
 0x165   :  { %v2092_v32 = vpop.permute.xlu0 %1096 }
 0x188   :  { %v1540_v36 = vpop.f32.mrf.mxu1 }
 0x189   :  { %958 = vrot.lane.b32.xlu0 %v1540_v36, %s1641_s7  ;;  %v2097_v36 = vpop.permute.xlu1 %1098 }
 0x18a   :  { %v539_v37 = vpop.f32.mrf.mxu1 }
 0x18c   :  { %v1543_v63 = vpop.f32.mrf.mxu1 }
 0x18d   :  { %962 = vrot.lane.b32.xlu1 %v1543_v63, %s1641_s7  ;;  %956 = vrot.lane.b32.xlu0 %v539_v37, %s1641_s7  ;;  %v2099_v37 = vpop.permute.xlu0 %1100 }
 0x18e   :  { %v549_v1 = vpop.f32.mrf.mxu1 }
 0x190   :  { %v1546_v2 = vpop.f32.mrf.mxu1 }
 0x191   :  { %960 = vrot.lane.b32.xlu1 %v549_v1, %s1641_s7 }
 0x192   :  { %v559_v4 = vpop.f32.mrf.mxu1 }
 0x193   :  { %964 = vrot.lane.b32.xlu0 %v559_v4, %s1641_s7  ;;  %v2104_v4 = vpop.permute.xlu1 %1102 }
 0x194   :  { %v1549_v5 = vpop.f32.mrf.mxu1 }
 0x195   :  { %966 = vrot.lane.b32.xlu1 %v1546_v2, %s1641_s7 }
 0x196   :  { %v569_v7 = vpop.f32.mrf.mxu1 }
 0x197   :  { %968 = vrot.lane.b32.xlu0 %v569_v7, %s1641_s7 }
 0x198   :  { %v1552_v8 = vpop.f32.mrf.mxu1 }
 0x199   :  { %970 = vrot.lane.b32.xlu1 %v1549_v5, %s1641_s7  ;;  %v2106_v5 = vpop.permute.xlu0 %1104 }
 0x19a   :  { %v579_v10 = vpop.f32.mrf.mxu1 }
 0x19b   :  { %972 = vrot.lane.b32.xlu0 %v579_v10, %s1641_s7 }
 0x19c   :  { %v1555_v11 = vpop.f32.mrf.mxu1 }
 0x19d   :  { %974 = vrot.lane.b32.xlu1 %v1552_v8, %s1641_s7 }
 0x19e   :  { %v589_v13 = vpop.f32.mrf.mxu1 }
 0x19f   :  { %976 = vrot.lane.b32.xlu0 %v589_v13, %s1641_s7  ;;  %v2111_v13 = vpop.permute.xlu1 %1106 }
 0x1a0   :  { %v1558_v14 = vpop.f32.mrf.mxu1 }
 0x1a1   :  { %978 = vrot.lane.b32.xlu1 %v1555_v11, %s1641_s7  ;;  %v1635_v11 = vpop.f32.mrf.mxu0 }
 0x1a2   :  { %v599_v17 = vpop.f32.mrf.mxu1 }
 0x1a3   :  { %980 = vrot.lane.b32.xlu0 %v599_v17, %s1641_s7 }
 0x1a4   :  { %v1561_v19 = vpop.f32.mrf.mxu1 }
 0x1a5   :  { %982 = vrot.lane.b32.xlu1 %v1558_v14, %s1641_s7  ;;  %v2113_v14 = vpop.permute.xlu0 %1108 }
 0x1a6   :  { %v609_v20 = vpop.f32.mrf.mxu1 }
 0x1a7   :  { %984 = vrot.lane.b32.xlu0 %v609_v20, %s1641_s7  ;;  %v2118_v20 = vpop.permute.xlu1 %1110 }
 0x1a8   :  { %v1564_v23 = vpop.f32.mrf.mxu1 }
 0x1a9   :  { %986 = vrot.lane.b32.xlu1 %v1561_v19, %s1641_s7  ;;  %v915_v19 = vpop.f32.mrf.mxu0 }
 0x1aa   :  { %v619_v24 = vpop.f32.mrf.mxu1 }
 0x1ab   :  { %988 = vrot.lane.b32.xlu0 %v619_v24, %s1641_s7  ;;  %v2123_v24 = vpop.permute.xlu1 %1114 }
 0x1ac   :  { %v1567_v25 = vpop.f32.mrf.mxu1 }
 0x1ad   :  { %990 = vrot.lane.b32.xlu1 %v1564_v23, %s1641_s7  ;;  %v2120_v23 = vpop.permute.xlu0 %1112 }
 0x1ae   :  { %v629_v28 = vpop.f32.mrf.mxu1 }
 0x1af   :  { %992 = vrot.lane.b32.xlu0 %v629_v28, %s1641_s7  ;;  %v2127_v28 = vpop.permute.xlu1 %1118 }
 0x1b0   :  { %v1570_v29 = vpop.f32.mrf.mxu1 }
 0x1b1   :  { %994 = vrot.lane.b32.xlu1 %v1567_v25, %s1641_s7  ;;  %v2125_v25 = vpop.permute.xlu0 %1116 }
 0x1b2   :  { %v639_v30 = vpop.f32.mrf.mxu1 }
 0x1b3   :  { %996 = vrot.lane.b32.xlu0 %v639_v30, %s1641_s7  ;;  %v2131_v30 = vpop.permute.xlu1 %1122 }
 0x1b4   :  { %v1573_v33 = vpop.f32.mrf.mxu1 }
 0x1b5   :  { %998 = vrot.lane.b32.xlu1 %v1570_v29, %s1641_s7  ;;  %v2129_v29 = vpop.permute.xlu0 %1120 }
 0x1b6   :  { %v649_v34 = vpop.f32.mrf.mxu1 }
 0x1b7   :  { %1000 = vrot.lane.b32.xlu0 %v649_v34, %s1641_s7  ;;  %v2135_v34 = vpop.permute.xlu1 %1126 }
 0x1b8   :  { %v1576_v35 = vpop.f32.mrf.mxu1 }
 0x1b9   :  { %1002 = vrot.lane.b32.xlu1 %v1573_v33, %s1641_s7  ;;  %v2133_v33 = vpop.permute.xlu0 %1124 }
 0x1ba   :  { %v659_v63 = vpop.f32.mrf.mxu1 }
 0x1bb   :  { %1004 = vrot.lane.b32.xlu0 %v659_v63, %s1641_s7  ;;  %v2139_v63 = vpop.permute.xlu1 %1130 }
 0x1bc   :  { %v1579_v1 = vpop.f32.mrf.mxu1 }
 0x1bd   :  { %1006 = vrot.lane.b32.xlu1 %v1576_v35, %s1641_s7  ;;  %v2137_v35 = vpop.permute.xlu0 %1128 }
 0x1be   :  { %v669_v2 = vpop.f32.mrf.mxu1 }
 0x1bf   :  { %1008 = vrot.lane.b32.xlu0 %v669_v2, %s1641_s7  ;;  %v2143_v2 = vpop.permute.xlu1 %1134 }
 0x1c0   :  { %v1582_v7 = vpop.f32.mrf.mxu1 }
 0x1c1   :  { %1010 = vrot.lane.b32.xlu1 %v1579_v1, %s1641_s7  ;;  %v2141_v1 = vpop.permute.xlu0 %1132 }
 0x1c2   :  { %v679_v8 = vpop.f32.mrf.mxu1 }
 0x1c3   :  { %1012 = vrot.lane.b32.xlu0 %v679_v8, %s1641_s7  ;;  %v2147_v8 = vpop.permute.xlu1 %1138 }
 0x1c4   :  { %v1585_v10 = vpop.f32.mrf.mxu1 }
 0x1c5   :  { %1014 = vrot.lane.b32.xlu1 %v1582_v7, %s1641_s7  ;;  %v2145_v7 = vpop.permute.xlu0 %1136 }
 0x1c6   :  { %v689_v17 = vpop.f32.mrf.mxu1 }
 0x1c7   :  { %1016 = vrot.lane.b32.xlu0 %v689_v17, %s1641_s7 }
 0x1c9   :  { %1018 = vrot.lane.b32.xlu1 %v1585_v10, %s1641_s7  ;;  %v2149_v10 = vpop.permute.xlu0 %1140 }
 0x1ca   :  { %2420 = vst [vmem:[#allocation6_spill] sm:$0xff] %v2149_v10 }
 0x1cb   :  { %1144 = vrot.lane.b32.xlu0 %v915_v19, %s1640_s0 }
 0x1cd   :  { %1146 = vrot.lane.b32.xlu1 %v1635_v11, %s1640_s0  ;;  %v2151_v11 = vpop.permute.xlu1 %1142 }
 0x1ce   :  { %2421 = vst [vmem:[#allocation7_spill] sm:$0xff] %v2151_v11 }
 0x1fb   :  { %v959_v17 = vpop.permute.xlu0 %958 }
 0x1fc   :  { %v1181_v19 = vsel %vm376_vm1, %v1901_v38, %v959_v17 }
 0x1fd   :  { %v1214_v15 = vsel %vm1212_vm2, %v1181_v19, %v2076_v21 }
 0x1fe   :  { %1247 = vst.msk [vmem:[%s2411_s4 + $0x8] sm:$0xff] %vm1245_vm3, %v1214_v15 }
 0x1ff   :  { %v963_v18 = vpop.permute.xlu1 %962  ;;  %v957_v9 = vpop.permute.xlu0 %956 }
 0x200   :  { %v1183_v10 = vsel %vm376_vm1, %v1907_v40, %v963_v18  ;;  %v1180_v11 = vsel %vm376_vm1, %v1903_v39, %v957_v9 }
 0x201   :  { %v1216_v12 = vsel %vm1212_vm2, %v1183_v10, %v2083_v26  ;;  %v1213_v38 = vsel %vm1212_vm2, %v1180_v11, %v2071_v16 }
 0x202   :  { %1249 = vst.msk [vmem:[%s2411_s4 + $0x18] sm:$0xff] %vm1245_vm3, %v1216_v12  ;;  %1246 = vst.msk [vmem:[%s2411_s4] sm:$0xff] %vm1245_vm3, %v1213_v38 }
 0x203   :  { %v961_v40 = vpop.permute.xlu1 %960 }
 0x204   :  { %v1182_v39 = vsel %vm376_vm1, %v1913_v42, %v961_v40 }
 0x205   :  { %v1215_v9 = vsel %vm1212_vm2, %v1182_v39, %v2078_v22  ;;  %v965_v15 = vpop.permute.xlu0 %964 }
 0x206   :  { %1248 = vst.msk [vmem:[%s2411_s4 + $0x10] sm:$0xff] %vm1245_vm3, %v1215_v9  ;;  %v1184_v12 = vsel %vm376_vm1, %v1925_v46, %v965_v15 }
 0x207   :  { %v1217_v18 = vsel %vm1212_vm2, %v1184_v12, %v2085_v27  ;;  %v967_v16 = vpop.permute.xlu1 %966 }
 0x208   :  { %1250 = vst.msk [vmem:[%s2411_s4 + $0x20] sm:$0xff] %vm1245_vm3, %v1217_v18  ;;  %v1185_v42 = vsel %vm376_vm1, %v1919_v44, %v967_v16 }
 0x209   :  { %v1218_v21 = vsel %vm1212_vm2, %v1185_v42, %v2090_v31  ;;  %v969_v22 = vpop.permute.xlu0 %968 }
 0x20a   :  { %1251 = vst.msk [vmem:[%s2411_s4 + $0x28] sm:$0xff] %vm1245_vm3, %v1218_v21  ;;  %v1186_v46 = vsel %vm376_vm1, %v1935_v49, %v969_v22 }
 0x20b   :  { %v1219_v26 = vsel %vm1212_vm2, %v1186_v46, %v2092_v32  ;;  %v971_v27 = vpop.permute.xlu1 %970 }
 0x20c   :  { %1252 = vst.msk [vmem:[%s2411_s4 + $0x30] sm:$0xff] %vm1245_vm3, %v1219_v26  ;;  %v1187_v44 = vsel %vm376_vm1, %v1931_v48, %v971_v27 }
 0x20d   :  { %v1220_v31 = vsel %vm1212_vm2, %v1187_v44, %v2097_v36  ;;  %v973_v10 = vpop.permute.xlu0 %972 }
 0x20e   :  { %1253 = vst.msk [vmem:[%s2411_s4 + $0x38] sm:$0xff] %vm1245_vm3, %v1220_v31  ;;  %v1188_v49 = vsel %vm376_vm1, %v1945_v52, %v973_v10 }
 0x20f   :  { %v1221_v32 = vsel %vm1212_vm2, %v1188_v49, %v2099_v37  ;;  %v975_v11 = vpop.permute.xlu1 %974  ;;  %v2423_v49 = vld [vmem:[#allocation6_spill] sm:$0xff] }
 0x210   :  { %1254 = vst.msk [vmem:[%s2411_s4 + $0x40] sm:$0xff] %vm1245_vm3, %v1221_v32  ;;  %v1189_v48 = vsel %vm376_vm1, %v1941_v51, %v975_v11 }
 0x211   :  { %v1222_v36 = vsel %vm1212_vm2, %v1189_v48, %v2104_v4  ;;  %v977_v17 = vpop.permute.xlu0 %976  ;;  %v2425_v48 = vld [vmem:[#allocation7_spill] sm:$0xff] }
 0x212   :  { %1255 = vst.msk [vmem:[%s2411_s4 + $0x48] sm:$0xff] %vm1245_vm3, %v1222_v36  ;;  %v1190_v52 = vsel %vm376_vm1, %v1955_v55, %v977_v17 }
 0x213   :  { %v1223_v37 = vsel %vm1212_vm2, %v1190_v52, %v2106_v5  ;;  %v979_v19 = vpop.permute.xlu1 %978 }
 0x214   :  { %1256 = vst.msk [vmem:[%s2411_s4 + $0x50] sm:$0xff] %vm1245_vm3, %v1223_v37  ;;  %v1191_v51 = vsel %vm376_vm1, %v1951_v54, %v979_v19  ;;  %v2426_v37 = vld [vmem:[#allocation5_spill] sm:$0xff] }
 0x215   :  { %v1224_v4 = vsel %vm1212_vm2, %v1191_v51, %v2111_v13  ;;  %v981_v38 = vpop.permute.xlu0 %980 }
 0x216   :  { %1257 = vst.msk [vmem:[%s2411_s4 + $0x58] sm:$0xff] %vm1245_vm3, %v1224_v4  ;;  %v1192_v55 = vsel %vm376_vm1, %v1965_v58, %v981_v38  ;;  %v2427_v38 = vld [vmem:[#allocation4_spill] sm:$0xff] }
 0x217   :  { %v1225_v5 = vsel %vm1212_vm2, %v1192_v55, %v2113_v14  ;;  %v983_v40 = vpop.permute.xlu1 %982 }
 0x218   :  { %1258 = vst.msk [vmem:[%s2411_s4 + $0x60] sm:$0xff] %vm1245_vm3, %v1225_v5  ;;  %v1193_v54 = vsel %vm376_vm1, %v1961_v57, %v983_v40 }
 0x219   :  { %v1226_v13 = vsel %vm1212_vm2, %v1193_v54, %v2118_v20  ;;  %v985_v39 = vpop.permute.xlu0 %984 }
 0x21a   :  { %1259 = vst.msk [vmem:[%s2411_s4 + $0x68] sm:$0xff] %vm1245_vm3, %v1226_v13  ;;  %v1194_v58 = vsel %vm376_vm1, %v1975_v61, %v985_v39 }
 0x21b   :  { %v1227_v14 = vsel %vm1212_vm2, %v1194_v58, %v2120_v23  ;;  %v987_v9 = vpop.permute.xlu1 %986 }
 0x21c   :  { %1260 = vst.msk [vmem:[%s2411_s4 + $0x70] sm:$0xff] %vm1245_vm3, %v1227_v14  ;;  %v1195_v57 = vsel %vm376_vm1, %v1971_v60, %v987_v9 }
 0x21d   :  { %v1228_v20 = vsel %vm1212_vm2, %v1195_v57, %v2123_v24  ;;  %v989_v15 = vpop.permute.xlu0 %988 }
 0x21e   :  { %1261 = vst.msk [vmem:[%s2411_s4 + $0x78] sm:$0xff] %vm1245_vm3, %v1228_v20  ;;  %v1196_v61 = vsel %vm376_vm1, %v1915_v43, %v989_v15 }
 0x21f   :  { %v1229_v23 = vsel %vm1212_vm2, %v1196_v61, %v2125_v25  ;;  %v991_v12 = vpop.permute.xlu1 %990 }
 0x220   :  { %1262 = vst.msk [vmem:[%s2411_s4 + $0x80] sm:$0xff] %vm1245_vm3, %v1229_v23  ;;  %v1197_v60 = vsel %vm376_vm1, %v1911_v41, %v991_v12 }
 0x221   :  { %v1230_v24 = vsel %vm1212_vm2, %v1197_v60, %v2127_v28  ;;  %v993_v18 = vpop.permute.xlu0 %992 }
 0x222   :  { %1263 = vst.msk [vmem:[%s2411_s4 + $0x88] sm:$0xff] %vm1245_vm3, %v1230_v24  ;;  %v1198_v43 = vsel %vm376_vm1, %v1927_v47, %v993_v18 }
 0x223   :  { %v1231_v25 = vsel %vm1212_vm2, %v1198_v43, %v2129_v29  ;;  %v995_v16 = vpop.permute.xlu1 %994 }
 0x224   :  { %1264 = vst.msk [vmem:[%s2411_s4 + $0x90] sm:$0xff] %vm1245_vm3, %v1231_v25  ;;  %v1199_v41 = vsel %vm376_vm1, %v1923_v45, %v995_v16 }
 0x225   :  { %v1232_v28 = vsel %vm1212_vm2, %v1199_v41, %v2131_v30  ;;  %v997_v42 = vpop.permute.xlu0 %996 }
 0x226   :  { %1265 = vst.msk [vmem:[%s2411_s4 + $0x98] sm:$0xff] %vm1245_vm3, %v1232_v28  ;;  %v1200_v47 = vsel %vm376_vm1, %v1947_v53, %v997_v42 }
 0x227   :  { %v1233_v29 = vsel %vm1212_vm2, %v1200_v47, %v2133_v33  ;;  %v999_v21 = vpop.permute.xlu1 %998 }
 0x228   :  { %1266 = vst.msk [vmem:[%s2411_s4 + $0xa0] sm:$0xff] %vm1245_vm3, %v1233_v29  ;;  %v1201_v45 = vsel %vm376_vm1, %v1937_v50, %v999_v21 }
 0x229   :  { %v1234_v30 = vsel %vm1212_vm2, %v1201_v45, %v2135_v34  ;;  %v1001_v22 = vpop.permute.xlu0 %1000 }
 0x22a   :  { %1267 = vst.msk [vmem:[%s2411_s4 + $0xa8] sm:$0xff] %vm1245_vm3, %v1234_v30  ;;  %v1202_v53 = vsel %vm376_vm1, %v1967_v59, %v1001_v22 }
 0x22b   :  { %v1235_v33 = vsel %vm1212_vm2, %v1202_v53, %v2137_v35  ;;  %v1003_v46 = vpop.permute.xlu1 %1002 }
 0x22c   :  { %1268 = vst.msk [vmem:[%s2411_s4 + $0xb0] sm:$0xff] %vm1245_vm3, %v1235_v33  ;;  %v1203_v50 = vsel %vm376_vm1, %v1957_v56, %v1003_v46 }
 0x22d   :  { %v1236_v34 = vsel %vm1212_vm2, %v1203_v50, %v2139_v63  ;;  %v1005_v26 = vpop.permute.xlu0 %1004 }
 0x22e   :  { %1269 = vst.msk [vmem:[%s2411_s4 + $0xb8] sm:$0xff] %vm1245_vm3, %v1236_v34  ;;  %v1204_v59 = vsel %vm376_vm1, %v1986_v0, %v1005_v26 }
 0x22f   :  { %v1237_v35 = vsel %vm1212_vm2, %v1204_v59, %v2141_v1  ;;  %v1007_v27 = vpop.permute.xlu1 %1006 }
 0x230   :  { %1270 = vst.msk [vmem:[%s2411_s4 + $0xc0] sm:$0xff] %vm1245_vm3, %v1237_v35  ;;  %v1205_v56 = vsel %vm376_vm1, %v1977_v62, %v1007_v27 }
 0x231   :  { %v1238_v63 = vsel %vm1212_vm2, %v1205_v56, %v2143_v2  ;;  %v1009_v44 = vpop.permute.xlu0 %1008 }
 0x232   :  { %1271 = vst.msk [vmem:[%s2411_s4 + $0xc8] sm:$0xff] %vm1245_vm3, %v1238_v63  ;;  %v1206_v0 = vsel %vm376_vm1, %v2002_v6, %v1009_v44  ;;  %v2422_v6 = vld [vmem:[#allocation3_spill] sm:$0xff] }
 0x233   :  { %v1239_v1 = vsel %vm1212_vm2, %v1206_v0, %v2145_v7  ;;  %v1011_v31 = vpop.permute.xlu1 %1010 }
 0x234   :  { %1272 = vst.msk [vmem:[%s2411_s4 + $0xd0] sm:$0xff] %vm1245_vm3, %v1239_v1  ;;  %v1207_v62 = vsel %vm376_vm1, %v1994_v3, %v1011_v31  ;;  %v2424_v3 = vld [vmem:[#allocation2_spill] sm:$0xff] }
 0x235   :  { %v1240_v2 = vsel %vm1212_vm2, %v1207_v62, %v2147_v8  ;;  %v1013_v10 = vpop.permute.xlu0 %1012 }
 0x236   :  { %1273 = vst.msk [vmem:[%s2411_s4 + $0xd8] sm:$0xff] %vm1245_vm3, %v1240_v2  ;;  %v1208_v7 = vsel %vm376_vm1, %v2422_v6, %v1013_v10 }
 0x237   :  { %v1241_v32 = vsel %vm1212_vm2, %v1208_v7, %v2423_v49  ;;  %v1015_v11 = vpop.permute.xlu1 %1014 }
 0x238   :  { %1274 = vst.msk [vmem:[%s2411_s4 + $0xe0] sm:$0xff] %vm1245_vm3, %v1241_v32  ;;  %v1209_v8 = vsel %vm376_vm1, %v2424_v3, %v1015_v11 }
 0x239   :  { %v1242_v36 = vsel %vm1212_vm2, %v1209_v8, %v2425_v48  ;;  %v1017_v17 = vpop.permute.xlu0 %1016 }
 0x23a   :  { %1275 = vst.msk [vmem:[%s2411_s4 + $0xe8] sm:$0xff] %vm1245_vm3, %v1242_v36  ;;  %v1210_v19 = vsel %vm376_vm1, %v2426_v37, %v1017_v17 }
 0x23b   :  { %v1019_v52 = vpop.permute.xlu1 %1018 }
 0x23c   :  { %v1211_v55 = vsel %vm376_vm1, %v2427_v38, %v1019_v52 }
 0x23d   :  { %v1145_v51 = vpop.permute.xlu0 %1144 }
 0x23e   :  { %v1243_v4 = vsel %vm1212_vm2, %v1210_v19, %v1145_v51 }
 0x23f   :  { %1276 = vst.msk [vmem:[%s2411_s4 + $0xf0] sm:$0xff] %vm1245_vm3, %v1243_v4  ;;  %v1147_v5 = vpop.permute.xlu1 %1146 }
 0x240   :  { %v1244_v40 = vsel %vm1212_vm2, %v1211_v55, %v1147_v5 }
 0x241   :  { %1277 = vst.msk [vmem:[%s2411_s4 + $0xf8] sm:$0xff] %vm1245_vm3, %v1244_v40 }

</bundles_post_ra>
